<compile_context>
chip_gen: v6e
topology: v6e:2x2x1
jax: 0.10.0
libtpu: 0.0.40
codegen_flags: <defaults>
</compile_context>

<pallas_src>
import jax
import jax.numpy as jnp
from jax.experimental import pallas as pl
from jax.experimental.pallas import tpu as pltpu


# ----------------------------- config ("yaml") ------------------------------
CFG = {
    "expected_input_shape": [2, 4, 16, 16],   # N, C, H, W
    "nc": 10,
    "hidden": 32,
    "output_layers": [-1],
}

NC_PAD = 128   # classifier output padded to one full lane tile (unmasked vst)


# ------------------------------ Pallas kernel -------------------------------
def _head_kernel(x_ref, wc_ref, wf_ref, out_ref):
    """Whole-batch classification head in one gridless program.

    x_ref  : (N*C, HW)          feature map, channel rows stacked, HW lane-dense
    wc_ref : (hidden, C+1)      packed [w1^T | b1]   (BN folded)
    wf_ref : (hidden+1, NC_PAD) packed [w2 * 1/HW ; b2], zero-padded lanes
    out_ref: (N, NC_PAD)        padded logits (lane-dense store)
    """
    x = x_ref[...]                                   # (N*C, HW) f32
    wc = wc_ref[...]                                 # (hidden, C+1)
    wf = wf_ref[...]                                 # (hidden+1, NC_PAD)
    hidden, c1 = wc.shape
    C = c1 - 1
    N = x.shape[0] // C

    b1 = wc[:, C:C + 1]                              # (hidden, 1) conv bias

    # 1x1 conv as C unrolled VPU broadcast-FMAs (K=C=4 is far too small for
    # the MXU).  The bias initialises the accumulation -> no separate
    # (hidden, HW) bias-add pass.
    # TODO(synk): once C grows past ~16, switch this to the MXU via
    #   jnp.einsum('hc,ncp->nhp', w1, x, preferred_element_type=jnp.float32).
    h_rows = []
    for n in range(N):                               # static unroll, N tiny
        base = n * C
        h = b1 + wc[:, 0:1] * x[base:base + 1, :]    # (hidden, HW)
        for c in range(1, C):                        # static unroll, C tiny
            h = h + wc[:, c:c + 1] * x[base + c:base + c + 1, :]
        # SiLU in f32 (v5e has no bf16 VPU/EUP; sigmoid goes to the EUP).
        # TODO(synk): bf16 h/SiLU on v6e/v7x at realistic sizes (keep GAP
        # accumulation in f32).
        h_rows.append(h * jax.nn.sigmoid(h))
    hs = jnp.stack(h_rows, axis=0)                   # (N, hidden, HW)

    # Global average pool: lane-axis sum; the 1/HW is folded into w2.
    pooled = jnp.sum(hs, axis=-1)                    # (N, hidden)

    # Batched classifier: one MXU matmul, single lane-dense (N, 128) store.
    w2 = wf[:hidden, :]                              # (hidden, NC_PAD)
    b2 = wf[hidden:hidden + 1, :]                    # (1, NC_PAD)
    logits = jnp.dot(pooled, w2,
                     preferred_element_type=jnp.float32) + b2
    out_ref[...] = logits.astype(out_ref.dtype)


# ------------------------- one-time parameter prep --------------------------
def prepare_params(params, hw):
    """One-time parameter transform (hoisted out of the per-call path):
    transpose w1, fold conv bias and the 1/HW GAP scale, and pack everything
    into two small lane-dense f32 carriers so the kernel takes 3 inputs."""
    w1 = params["w1"].astype(jnp.float32)            # (C, hidden)
    b1 = params["b1"].astype(jnp.float32)            # (hidden,)
    w2 = params["w2"].astype(jnp.float32)            # (hidden, nc)
    b2 = params["b2"].astype(jnp.float32)            # (nc,)
    C, hidden = w1.shape
    nc = w2.shape[1]
    assert nc <= NC_PAD

    wc = jnp.concatenate([w1.T, b1[:, None]], axis=1)          # (hidden, C+1)
    wf = jnp.zeros((hidden + 1, NC_PAD), jnp.float32)
    wf = wf.at[:hidden, :nc].set(w2 / float(hw))               # GAP fold
    wf = wf.at[hidden, :nc].set(b2)
    return {"wc": wc, "wf": wf, "nc": nc, "hidden": hidden, "C": C}


# --------------------------------- forward ----------------------------------
def classification_head_forward(xs, prepped):
    """Mirrors BuildClassificationHead.forward: xs is a list of feature maps;
    the head consumes xs[-1] and returns [logits] (output_layers = [-1])."""
    x_nchw = xs[-1]                                  # (N, C, H, W) PyTorch layout
    N, C, H, W = x_nchw.shape
    HW = H * W
    nc = prepped["nc"]

    # Pure reshape of contiguous NCHW: channel rows on sublanes, HW on the
    # 128-wide lane axis.  (2, 4, 16, 16) -> (8, 256) is exactly one unpadded
    # sublane tile.
    x2d = x_nchw.reshape(N * C, HW)

    vmem = pl.BlockSpec(memory_space=pltpu.MemorySpace.VMEM)
    # Gridless single program: at this size the kernel is fixed-overhead /
    # DMA-latency bound, so only 3 input DMAs and no per-step pipeline cost.
    # TODO(synk): v7x — add a "parallel" grid axis (dimension_semantics) to
    # use both TensorCores once per-core work amortizes ~0.35 us/grid-step.
    logits_pad = pl.pallas_call(
        _head_kernel,
        out_shape=jax.ShapeDtypeStruct((N, NC_PAD), jnp.float32),
        in_specs=[vmem, vmem, vmem],
        out_specs=vmem,
    )(x2d, prepped["wc"], prepped["wf"])

    # forward() returns a list indexed by sorted(output_layers); here just [-1].
    return [logits_pad[:, :nc]]


# --------------------------- deterministic params ---------------------------
def init_params(key, c_in, hidden, nc):
    k1, k2, k3, k4 = jax.random.split(key, 4)
    # 1x1 conv weight stored as (C_in, hidden); BN is folded into scale/bias.
    w1 = 0.1 * jax.random.normal(k1, (c_in, hidden), dtype=jnp.float32)
    b1 = 0.01 * jax.random.normal(k2, (hidden,), dtype=jnp.float32)
    w2 = 0.1 * jax.random.normal(k3, (hidden, nc), dtype=jnp.float32)
    b2 = 0.01 * jax.random.normal(k4, (nc,), dtype=jnp.float32)
    return {"w1": w1, "b1": b1, "w2": w2, "b2": b2}


# pure-JAX reference for a sanity check
def _reference(xs, params):
    x = xs[-1].astype(jnp.float32)                   # (N, C, H, W)
    N, C, H, W = x.shape
    xp = jnp.transpose(x, (0, 2, 3, 1)).reshape(N, H * W, C)
    h = jnp.einsum("npc,ch->nph", xp, params["w1"]) + params["b1"]
    h = h * jax.nn.sigmoid(h)
    pooled = jnp.mean(h, axis=1)                     # (N, hidden)
    return [pooled @ params["w2"] + params["b2"]]


if __name__ == "__main__":
    N, C, H, W = CFG["expected_input_shape"]
    hidden, nc = CFG["hidden"], CFG["nc"]

    key = jax.random.PRNGKey(0)
    kx, kp = jax.random.split(key)
    feat = jax.random.normal(kx, (N, C, H, W), dtype=jnp.float32)
    xs = [feat]                                      # list of feature maps, as in forward(xs)

    params = init_params(kp, C, hidden, nc)
    prepped = prepare_params(params, H * W)          # one-time weight packing

    result = classification_head_forward(xs, prepped)
    result = [jax.block_until_ready(r) for r in result]

    ref = _reference(xs, params)
    for a, b in zip(result, ref):
        assert a.shape == b.shape == (N, nc)
        assert jnp.allclose(a, b, atol=1e-4, rtol=1e-4)

    print("KERNEL_OK")
</pallas_src>

<mosaic_0001>
module attributes {stable_mosaic.version = 11 : i64} {
  func.func @_head_kernel(%arg0: memref<8x256xf32, #tpu.memory_space<vmem>>, %arg1: memref<32x5xf32, #tpu.memory_space<vmem>>, %arg2: memref<33x128xf32, #tpu.memory_space<vmem>>, %arg3: memref<2x128xf32, #tpu.memory_space<vmem>>) attributes {dimension_semantics = [], scalar_prefetch = 0 : i64, scratch_operands = 0 : i64, tpu.core_type = #tpu.core_type<tc>} {
    %c0 = arith.constant 0 : index
    %c0_0 = arith.constant 0 : index
    %0 = vector.load %arg0[%c0, %c0_0] : memref<8x256xf32, #tpu.memory_space<vmem>>, vector<8x256xf32>
    %c0_1 = arith.constant 0 : index
    %c0_2 = arith.constant 0 : index
    %1 = vector.load %arg1[%c0_1, %c0_2] : memref<32x5xf32, #tpu.memory_space<vmem>>, vector<32x5xf32>
    %c0_3 = arith.constant 0 : index
    %c0_4 = arith.constant 0 : index
    %2 = vector.load %arg2[%c0_3, %c0_4] : memref<33x128xf32, #tpu.memory_space<vmem>>, vector<33x128xf32>
    %3 = vector.extract_strided_slice %1 {offsets = [0, 4], sizes = [32, 1], strides = [1, 1]} : vector<32x5xf32> to vector<32x1xf32>
    %4 = vector.extract_strided_slice %1 {offsets = [0, 0], sizes = [32, 1], strides = [1, 1]} : vector<32x5xf32> to vector<32x1xf32>
    %5 = vector.extract_strided_slice %0 {offsets = [0, 0], sizes = [1, 256], strides = [1, 1]} : vector<8x256xf32> to vector<1x256xf32>
    %6 = vector.broadcast %4 : vector<32x1xf32> to vector<32x256xf32>
    %7 = vector.broadcast %5 : vector<1x256xf32> to vector<32x256xf32>
    %8 = arith.mulf %6, %7 : vector<32x256xf32>
    %9 = vector.broadcast %3 : vector<32x1xf32> to vector<32x256xf32>
    %10 = arith.addf %9, %8 : vector<32x256xf32>
    %11 = vector.extract_strided_slice %1 {offsets = [0, 1], sizes = [32, 1], strides = [1, 1]} : vector<32x5xf32> to vector<32x1xf32>
    %12 = vector.extract_strided_slice %0 {offsets = [1, 0], sizes = [1, 256], strides = [1, 1]} : vector<8x256xf32> to vector<1x256xf32>
    %13 = vector.broadcast %11 : vector<32x1xf32> to vector<32x256xf32>
    %14 = vector.broadcast %12 : vector<1x256xf32> to vector<32x256xf32>
    %15 = arith.mulf %13, %14 : vector<32x256xf32>
    %16 = arith.addf %10, %15 : vector<32x256xf32>
    %17 = vector.extract_strided_slice %1 {offsets = [0, 2], sizes = [32, 1], strides = [1, 1]} : vector<32x5xf32> to vector<32x1xf32>
    %18 = vector.extract_strided_slice %0 {offsets = [2, 0], sizes = [1, 256], strides = [1, 1]} : vector<8x256xf32> to vector<1x256xf32>
    %19 = vector.broadcast %17 : vector<32x1xf32> to vector<32x256xf32>
    %20 = vector.broadcast %18 : vector<1x256xf32> to vector<32x256xf32>
    %21 = arith.mulf %19, %20 : vector<32x256xf32>
    %22 = arith.addf %16, %21 : vector<32x256xf32>
    %23 = vector.extract_strided_slice %1 {offsets = [0, 3], sizes = [32, 1], strides = [1, 1]} : vector<32x5xf32> to vector<32x1xf32>
    %24 = vector.extract_strided_slice %0 {offsets = [3, 0], sizes = [1, 256], strides = [1, 1]} : vector<8x256xf32> to vector<1x256xf32>
    %25 = vector.broadcast %23 : vector<32x1xf32> to vector<32x256xf32>
    %26 = vector.broadcast %24 : vector<1x256xf32> to vector<32x256xf32>
    %27 = arith.mulf %25, %26 : vector<32x256xf32>
    %28 = arith.addf %22, %27 : vector<32x256xf32>
    %29 = arith.negf %28 : vector<32x256xf32>
    %30 = math.exp %29 : vector<32x256xf32>
    %cst = arith.constant 1.000000e+00 : f32
    %31 = vector.broadcast %cst : f32 to vector<32x256xf32>
    %32 = arith.addf %31, %30 : vector<32x256xf32>
    %33 = arith.divf %31, %32 : vector<32x256xf32>
    %34 = arith.mulf %28, %33 : vector<32x256xf32>
    %35 = vector.extract_strided_slice %1 {offsets = [0, 0], sizes = [32, 1], strides = [1, 1]} : vector<32x5xf32> to vector<32x1xf32>
    %36 = vector.extract_strided_slice %0 {offsets = [4, 0], sizes = [1, 256], strides = [1, 1]} : vector<8x256xf32> to vector<1x256xf32>
    %37 = vector.broadcast %35 : vector<32x1xf32> to vector<32x256xf32>
    %38 = vector.broadcast %36 : vector<1x256xf32> to vector<32x256xf32>
    %39 = arith.mulf %37, %38 : vector<32x256xf32>
    %40 = vector.broadcast %3 : vector<32x1xf32> to vector<32x256xf32>
    %41 = arith.addf %40, %39 : vector<32x256xf32>
    %42 = vector.extract_strided_slice %1 {offsets = [0, 1], sizes = [32, 1], strides = [1, 1]} : vector<32x5xf32> to vector<32x1xf32>
    %43 = vector.extract_strided_slice %0 {offsets = [5, 0], sizes = [1, 256], strides = [1, 1]} : vector<8x256xf32> to vector<1x256xf32>
    %44 = vector.broadcast %42 : vector<32x1xf32> to vector<32x256xf32>
    %45 = vector.broadcast %43 : vector<1x256xf32> to vector<32x256xf32>
    %46 = arith.mulf %44, %45 : vector<32x256xf32>
    %47 = arith.addf %41, %46 : vector<32x256xf32>
    %48 = vector.extract_strided_slice %1 {offsets = [0, 2], sizes = [32, 1], strides = [1, 1]} : vector<32x5xf32> to vector<32x1xf32>
    %49 = vector.extract_strided_slice %0 {offsets = [6, 0], sizes = [1, 256], strides = [1, 1]} : vector<8x256xf32> to vector<1x256xf32>
    %50 = vector.broadcast %48 : vector<32x1xf32> to vector<32x256xf32>
    %51 = vector.broadcast %49 : vector<1x256xf32> to vector<32x256xf32>
    %52 = arith.mulf %50, %51 : vector<32x256xf32>
    %53 = arith.addf %47, %52 : vector<32x256xf32>
    %54 = vector.extract_strided_slice %1 {offsets = [0, 3], sizes = [32, 1], strides = [1, 1]} : vector<32x5xf32> to vector<32x1xf32>
    %55 = vector.extract_strided_slice %0 {offsets = [7, 0], sizes = [1, 256], strides = [1, 1]} : vector<8x256xf32> to vector<1x256xf32>
    %56 = vector.broadcast %54 : vector<32x1xf32> to vector<32x256xf32>
    %57 = vector.broadcast %55 : vector<1x256xf32> to vector<32x256xf32>
    %58 = arith.mulf %56, %57 : vector<32x256xf32>
    %59 = arith.addf %53, %58 : vector<32x256xf32>
    %60 = arith.negf %59 : vector<32x256xf32>
    %61 = math.exp %60 : vector<32x256xf32>
    %cst_5 = arith.constant 1.000000e+00 : f32
    %62 = vector.broadcast %cst_5 : f32 to vector<32x256xf32>
    %63 = arith.addf %62, %61 : vector<32x256xf32>
    %64 = arith.divf %62, %63 : vector<32x256xf32>
    %65 = arith.mulf %59, %64 : vector<32x256xf32>
    %66 = vector.shape_cast %34 : vector<32x256xf32> to vector<1x32x256xf32>
    %67 = vector.shape_cast %65 : vector<32x256xf32> to vector<1x32x256xf32>
    %68 = tpu.concatenate %66, %67 in 0 : vector<1x32x256xf32>, vector<1x32x256xf32> -> vector<2x32x256xf32>
    %cst_6 = arith.constant dense<0.000000e+00> : vector<2x32xf32>
    %69 = vector.multi_reduction <add>, %68, %cst_6 [2] : vector<2x32x256xf32> to vector<2x32xf32>
    %70 = vector.extract_strided_slice %2 {offsets = [0, 0], sizes = [32, 128], strides = [1, 1]} : vector<33x128xf32> to vector<32x128xf32>
    %71 = vector.extract_strided_slice %2 {offsets = [32, 0], sizes = [1, 128], strides = [1, 1]} : vector<33x128xf32> to vector<1x128xf32>
    %cst_7 = arith.constant dense<0.000000e+00> : vector<2x128xf32>
    %72 = tpu.matmul %69, %70, %cst_7 {dimension_numbers = #tpu.dot_dimension_numbers<[1], [0], [0], [1], [0, 0, 1, 1], [], []>} : vector<2x32xf32>, vector<32x128xf32>, vector<2x128xf32> -> vector<2x128xf32>
    %73 = vector.broadcast %71 : vector<1x128xf32> to vector<2x128xf32>
    %74 = arith.addf %72, %73 : vector<2x128xf32>
    %c0_8 = arith.constant 0 : index
    %c0_9 = arith.constant 0 : index
    %75 = vector.load %arg3[%c0_8, %c0_9] : memref<2x128xf32, #tpu.memory_space<vmem>>, vector<2x128xf32>
    tpu.vector_store %arg3[%c0_8, %c0_9], %74 {strides = array<i32>} : memref<2x128xf32, #tpu.memory_space<vmem>>, vector<2x128xf32>,
    return
  }
}

</mosaic_0001>

<bundles_post_ra>
// kernel: tpu_custom_call.1
= control target key start
LH: loop header
LB: loop body
LE: loop exit
PB: predicated region body
PF: predicated region fallthrough
CT: control target
= control target key end

     0   :  { %8 = vsyncpa [#allocation3], 0  ;;  %s1000_s0 = inlined_call_operand.hbm [shape: f32[8,256], index: 0, kind: input, shape index: {}]   ;;  %s1001_s1 = inlined_call_operand.vmem [shape: f32[32,5], index: 1, kind: input, shape index: {}]   ;;  %s1002_s2 = inlined_call_operand.vmem [shape: f32[33,128], index: 2, kind: input, shape index: {}]   ;;  %s1003_s3 = inlined_call_operand.hbm [shape: f32[2,128], index: 3, kind: output, shape index: {}]  }
   0x1   :  { %9 = vsyncpa [#allocation4], 0  ;;  %s762_s12 = smov [#allocation2]  }
   0x2   :  { %s16_s13 = sshll.u32 %s762_s12, 4  ;;  %s17_s13 = int_to_ptr.vmem [resolvable:$true] %s16_s13 }
   0x3   :  { %s726_s14 = scalar_lea.vmem %s17_s13, 256  ;;  %p731_p1 = scmp.lt.s32.totalorder %s17_s13, %s17_s13 }
   0x4   :  { %p727_p0 = scmp.ne.s32.totalorder %s17_s13, %s726_s14  ;;  %p732_p2 = scmp.lt.s32.totalorder %s726_s14, %s726_s14 }
   0x6   :  { %p733_p3 = por %p732_p2, %p731_p1 }
   0x8   :  { %p734_p4 = pnand %p733_p3, %p727_p0 }
   0xa   :  { %737 = shalt.err (!%p734_p4)
}
   0xb   :  { %19 = dma.hbm_to_vmem [thread:$0]  %s1000_s0, 256, %s17_s13, [#allocation3]  }
   0xc   :  { %758 = dma.done.wait [#allocation3], 256  }
   0xd   :  { %759 = vsyncadd [#allocation3], 4294967040  ;;  %v763_v0 = vmov 0   ;;  %v31_v1 = vld [vmem:[%s1001_s1 + $0x10] sm:$0xff]  ;;  %v29_v2 = vld [vmem:[%s1001_s1] sm:$0xff]  ;;  %v764_v5 = vmov 4   ;;  %v58_v11 = vlaneseq }
   0xe   :  { %643 = vset.pattern.permute.xlu1 %v763_v0  ;;  %642 = vset.pattern.permute.xlu0 %v763_v0  ;;  %v32_v3 = vld [vmem:[%s1001_s1 + $0x18] sm:$0xff]  ;;  %v30_v4 = vld [vmem:[%s1001_s1 + $0x8] sm:$0xff]  ;;  %v765_v6 = vmov 1   ;;  %v766_v7 = vmov 2   ;;  %v767_v8 = vmov 3   ;;  %v27_v19 = vld [vmem:[#allocation2] sm:$0xff] }
   0xf   :  { %50 = vperm.xlu1 %643, %v31_v1   ;;  %40 = vperm.xlu0 %642, %v29_v2   ;;  %v811_v14 = vshrl.u32 %v58_v11, 7  ;;  %v28_v20 = vld [vmem:[#allocation2 + $0x8] sm:$0xff]  ;;  %vm769_vm0 = vmmov 0   ;;  %vm473_vm1 = vcmask 130112   ;;  %vm480_vm2 = vcmask 195712   ;;  %s770_s6 = smov [#allocation5]  }
  0x10   :  { %vm487_vm3 = vcmask 261312   ;;  %vm508_vm4 = vcmask 1041409   ;;  %vm510_vm5 = vcmask 261120   ;;  %s590_s7 = sshll.u32 %s770_s6, 4  ;;  %s591_s7 = int_to_ptr.vmem [resolvable:$true] %s590_s7 }
  0x11   :  { %v60_v17 = vsub.s32 0, %v811_v14  ;;  %v276_v18 = vsub.s32 4, %v811_v14  ;;  %v116_v21 = vsub.s32 1, %v811_v14  ;;  %v300_v22 = vsub.s32 5, %v811_v14  ;;  %s738_s8 = scalar_lea.vmem %s591_s7, 32  ;;  %p743_p6 = scmp.lt.s32.totalorder %s591_s7, %s591_s7 }
  0x12   :  { %v156_v24 = vsub.s32 2, %v811_v14  ;;  %v324_v28 = vsub.s32 6, %v811_v14  ;;  %v196_v29 = vsub.s32 3, %v811_v14  ;;  %v348_v33 = vsub.s32 7, %v811_v14  ;;  %p739_p5 = scmp.ne.s32.totalorder %s591_s7, %s738_s8  ;;  %p744_p7 = scmp.lt.s32.totalorder %s738_s8, %s738_s8 }
  0x13   :  { %55 = vperm.xlu1 %643, %v32_v3   ;;  %45 = vperm.xlu0 %642, %v30_v4   ;;  %v61_v25 = vrot.slane %v27_v19, %v60_v17  ;;  %v65_v26 = vrot.slane %v28_v20, %v60_v17  ;;  %v277_v30 = vrot.slane %v27_v19, %v276_v18 }
  0x14   :  { %v281_v31 = vrot.slane %v28_v20, %v276_v18  ;;  %v820_v32 = vrot.slane %v27_v19, %v116_v21  ;;  %v823_v34 = vrot.slane %v28_v20, %v116_v21  ;;  %v825_v35 = vrot.slane %v27_v19, %v300_v22  ;;  %p745_p8 = por %p744_p7, %p743_p6 }
  0x15   :  { %v827_v36 = vrot.slane %v28_v20, %v300_v22  ;;  %v829_v37 = vrot.slane %v27_v19, %v156_v24  ;;  %v831_v43 = vrot.slane %v28_v20, %v156_v24  ;;  %v833_v44 = vrot.slane %v27_v19, %v324_v28 }
  0x16   :  { %v835_v45 = vrot.slane %v28_v20, %v324_v28  ;;  %v837_v46 = vrot.slane %v27_v19, %v196_v29  ;;  %v839_v48 = vrot.slane %v28_v20, %v196_v29  ;;  %v841_v49 = vrot.slane %v27_v19, %v348_v33  ;;  %p746_p9 = pnand %p745_p8, %p739_p5 }
  0x17   :  { %644 = vset.pattern.permute.xlu1 %v764_v5  ;;  %646 = vset.pattern.permute.xlu0 %v765_v6  ;;  %v843_v50 = vrot.slane %v28_v20, %v348_v33 }
  0x18   :  { %79 = vperm.xlu1 %644, %v30_v4   ;;  %103 = vperm.xlu0 %646, %v30_v4  }
  0x1c   :  { %645 = vset.pattern.permute.xlu1 %v765_v6  ;;  %647 = vset.pattern.permute.xlu0 %v764_v5 }
  0x1d   :  { %99 = vperm.xlu1 %645, %v29_v2   ;;  %75 = vperm.xlu0 %647, %v29_v2  }
  0x21   :  { %648 = vset.pattern.permute.xlu1 %v764_v5  ;;  %87 = vperm.xlu0 %647, %v32_v3  }
  0x22   :  { %83 = vperm.xlu1 %648, %v31_v1  }
  0x25   :  { %651 = vset.pattern.permute.xlu0 %v766_v7 }
  0x26   :  { %649 = vset.pattern.permute.xlu1 %v765_v6  ;;  %143 = vperm.xlu0 %651, %v30_v4  }
  0x27   :  { %107 = vperm.xlu1 %649, %v31_v1  }
  0x2a   :  { %652 = vset.pattern.permute.xlu0 %v767_v8 }
  0x2b   :  { %111 = vperm.xlu1 %649, %v32_v3   ;;  %179 = vperm.xlu0 %652, %v29_v2  }
  0x2f   :  { %650 = vset.pattern.permute.xlu1 %v766_v7  ;;  %191 = vperm.xlu0 %652, %v32_v3  }
  0x30   :  { %139 = vperm.xlu1 %650, %v29_v2  }
  0x34   :  { %147 = vperm.xlu1 %650, %v31_v1  }
  0x38   :  { %151 = vperm.xlu1 %650, %v32_v3  }
  0x3c   :  { %653 = vset.pattern.permute.xlu1 %v767_v8 }
  0x3d   :  { %183 = vperm.xlu1 %653, %v30_v4  }
  0x41   :  { %187 = vperm.xlu1 %653, %v31_v1  }
  0x8a   :  { %v806_v9 = vpop.permute.xlu1 %50  ;;  %v41_v10 = vpop.permute.xlu0 %40 }
  0x8b   :  { %v66_v47 = vmul.f32 %v61_v25, %v41_v10  ;;  %v70_v51 = vmul.f32 %v61_v25, %v806_v9  ;;  %v67_v52 = vmul.f32 %v65_v26, %v41_v10  ;;  %v282_v53 = vmul.f32 %v277_v30, %v41_v10 }
  0x8c   :  { %v283_v54 = vmul.f32 %v281_v31, %v41_v10  ;;  %v71_v10 = vmul.f32 %v65_v26, %v806_v9 }
  0x8e   :  { %v808_v12 = vpop.permute.xlu1 %55  ;;  %v46_v13 = vpop.permute.xlu0 %45 }
  0x8f   :  { %v68_v38 = vmul.f32 %v61_v25, %v46_v13  ;;  %v69_v39 = vmul.f32 %v65_v26, %v46_v13  ;;  %v284_v40 = vmul.f32 %v277_v30, %v46_v13  ;;  %v285_v41 = vmul.f32 %v281_v31, %v46_v13 }
  0x90   :  { %v286_v13 = vmul.f32 %v277_v30, %v806_v9  ;;  %v73_v17 = vmul.f32 %v65_v26, %v808_v12  ;;  %v288_v18 = vmul.f32 %v277_v30, %v808_v12  ;;  %v289_v19 = vmul.f32 %v281_v31, %v808_v12 }
  0x93   :  { %v80_v15 = vpop.permute.xlu1 %79  ;;  %v104_v16 = vpop.permute.xlu0 %103 }
  0x94   :  { %v92_v56 = vadd.f32 %v80_v15, %v68_v38  ;;  %v93_v57 = vadd.f32 %v80_v15, %v69_v39  ;;  %v292_v58 = vadd.f32 %v284_v40, %v80_v15  ;;  %v293_v59 = vadd.f32 %v285_v41, %v80_v15 }
  0x95   :  { %v124_v60 = vmul.f32 %v820_v32, %v104_v16  ;;  %v125_v61 = vmul.f32 %v823_v34, %v104_v16  ;;  %v308_v62 = vmul.f32 %v825_v35, %v104_v16  ;;  %v309_v63 = vmul.f32 %v827_v36, %v104_v16 }
  0x96   :  { %v287_v15 = vmul.f32 %v281_v31, %v806_v9  ;;  %v72_v16 = vmul.f32 %v61_v25, %v808_v12 }
  0x97   :  { %v132_v20 = vadd.f32 %v124_v60, %v92_v56  ;;  %v316_v24 = vadd.f32 %v308_v62, %v292_v58 }
  0x98   :  { %v100_v23 = vpop.permute.xlu1 %99  ;;  %v76_v27 = vpop.permute.xlu0 %75 }
  0x99   :  { %v122_v1 = vmul.f32 %v820_v32, %v100_v23  ;;  %v123_v2 = vmul.f32 %v823_v34, %v100_v23  ;;  %v306_v3 = vmul.f32 %v825_v35, %v100_v23  ;;  %v90_v4 = vadd.f32 %v76_v27, %v66_v47 }
  0x9a   :  { %v307_v5 = vmul.f32 %v827_v36, %v100_v23  ;;  %v91_v6 = vadd.f32 %v76_v27, %v67_v52  ;;  %v290_v7 = vadd.f32 %v282_v53, %v76_v27  ;;  %v291_v8 = vadd.f32 %v283_v54, %v76_v27 }
  0x9b   :  { %v133_v23 = vadd.f32 %v125_v61, %v93_v57  ;;  %v317_v27 = vadd.f32 %v309_v63, %v293_v59  ;;  %v130_v28 = vadd.f32 %v122_v1, %v90_v4 }
  0x9c   :  { %v88_v55 = vpop.permute.xlu0 %87  ;;  %v131_v29 = vadd.f32 %v123_v2, %v91_v6  ;;  %v314_v33 = vadd.f32 %v306_v3, %v290_v7  ;;  %v315_v38 = vadd.f32 %v307_v5, %v291_v8 }
  0x9d   :  { %v84_v42 = vpop.permute.xlu1 %83  ;;  %v861_v39 = vadd.f32 %v88_v55, %v72_v16  ;;  %v863_v9 = vadd.f32 %v88_v55, %v73_v17  ;;  %v296_v25 = vadd.f32 %v288_v18, %v88_v55  ;;  %v297_v26 = vadd.f32 %v289_v19, %v88_v55 }
  0x9e   :  { %v94_v40 = vadd.f32 %v84_v42, %v70_v51  ;;  %v95_v30 = vadd.f32 %v84_v42, %v71_v10  ;;  %v294_v41 = vadd.f32 %v286_v13, %v84_v42  ;;  %v295_v12 = vadd.f32 %v287_v15, %v84_v42 }
  0xa1   :  { %v144_v21 = vpop.permute.xlu0 %143 }
  0xa2   :  { %v108_v0 = vpop.permute.xlu1 %107  ;;  %v164_v31 = vmul.f32 %v829_v37, %v144_v21  ;;  %v165_v52 = vmul.f32 %v831_v43, %v144_v21  ;;  %v332_v53 = vmul.f32 %v833_v44, %v144_v21  ;;  %v333_v54 = vmul.f32 %v835_v45, %v144_v21 }
  0xa3   :  { %v126_v4 = vmul.f32 %v820_v32, %v108_v0  ;;  %v127_v5 = vmul.f32 %v823_v34, %v108_v0  ;;  %v310_v6 = vmul.f32 %v825_v35, %v108_v0  ;;  %v311_v10 = vmul.f32 %v827_v36, %v108_v0 }
  0xa4   :  { %v172_v15 = vadd.f32 %v164_v31, %v132_v20  ;;  %v173_v16 = vadd.f32 %v165_v52, %v133_v23  ;;  %v340_v17 = vadd.f32 %v332_v53, %v316_v24  ;;  %v341_v21 = vadd.f32 %v333_v54, %v317_v27 }
  0xa5   :  { %v319_v54 = vadd.f32 %v311_v10, %v295_v12 }
  0xa6   :  { %v112_v22 = vpop.permute.xlu1 %111  ;;  %v180_v47 = vpop.permute.xlu0 %179 }
  0xa7   :  { %v312_v56 = vmul.f32 %v825_v35, %v112_v22  ;;  %v202_v59 = vmul.f32 %v837_v46, %v180_v47  ;;  %v203_v60 = vmul.f32 %v839_v48, %v180_v47  ;;  %v354_v61 = vmul.f32 %v841_v49, %v180_v47 }
  0xa8   :  { %v355_v62 = vmul.f32 %v843_v50, %v180_v47  ;;  %v313_v7 = vmul.f32 %v827_v36, %v112_v22  ;;  %v129_v35 = vmul.f32 %v823_v34, %v112_v22 }
  0xaa   :  { %v883_v13 = vpop.permute.xlu0 %191  ;;  %v321_v36 = vadd.f32 %v313_v7, %v297_v26  ;;  %v318_v26 = vadd.f32 %v310_v6, %v294_v41 }
  0xab   :  { %v140_v57 = vpop.permute.xlu1 %139  ;;  %v360_v20 = vmul.f32 %v841_v49, %v883_v13 }
  0xac   :  { %v162_v58 = vmul.f32 %v829_v37, %v140_v57  ;;  %v163_v55 = vmul.f32 %v831_v43, %v140_v57  ;;  %v330_v51 = vmul.f32 %v833_v44, %v140_v57  ;;  %v331_v42 = vmul.f32 %v835_v45, %v140_v57 }
  0xad   :  { %v137_v57 = vadd.f32 %v129_v35, %v863_v9 }
  0xae   :  { %v170_v63 = vadd.f32 %v162_v58, %v130_v28  ;;  %v171_v1 = vadd.f32 %v163_v55, %v131_v29  ;;  %v338_v2 = vadd.f32 %v330_v51, %v314_v33  ;;  %v339_v3 = vadd.f32 %v331_v42, %v315_v38 }
  0xaf   :  { %v148_v8 = vpop.permute.xlu1 %147  ;;  %v128_v29 = vmul.f32 %v820_v32, %v112_v22  ;;  %v320_v33 = vadd.f32 %v312_v56, %v296_v25  ;;  %v361_v32 = vmul.f32 %v843_v50, %v883_v13  ;;  %v134_v22 = vadd.f32 %v126_v4, %v94_v40 }
  0xb0   :  { %v885_v18 = vadd.f32 %v202_v59, %v170_v63  ;;  %v887_v19 = vadd.f32 %v203_v60, %v171_v1  ;;  %v889_v28 = vadd.f32 %v354_v61, %v338_v2  ;;  %v893_v38 = vadd.f32 %v355_v62, %v339_v3 }
  0xb1   :  { %v135_v25 = vadd.f32 %v127_v5, %v95_v30  ;;  %v136_v56 = vadd.f32 %v128_v29, %v861_v39  ;;  %v334_v58 = vmul.f32 %v833_v44, %v148_v8  ;;  %v335_v55 = vmul.f32 %v835_v45, %v148_v8 }
  0xb2   :  { %v599_v23 = vmul.f32 -1.442695, %v885_v18  ;;  %v600_v24 = vmul.f32 -1.442695, %v887_v19  ;;  %v607_v34 = vmul.f32 -1.442695, %v889_v28  ;;  %v166_v9 = vmul.f32 %v829_v37, %v148_v8 }
  0xb3   :  { %v152_v0 = vpop.permute.xlu1 %151  ;;  %v608_v47 = vmul.f32 -1.442695, %v893_v38  ;;  %v167_v63 = vmul.f32 %v831_v43, %v148_v8  ;;  %v342_v3 = vadd.f32 %v334_v58, %v318_v26  ;;  %v343_v4 = vadd.f32 %v335_v55, %v319_v54 }
  0xb4   :  { %v336_v27 = vmul.f32 %v833_v44, %v152_v0  ;;  %v337_v31 = vmul.f32 %v835_v45, %v152_v0  ;;  %654 = vpow2.f32 %v599_v23  ;;  %v168_v1 = vmul.f32 %v829_v37, %v152_v0 }
  0xb5   :  { %656 = vpow2.f32 %v600_v24  ;;  %v169_v5 = vmul.f32 %v831_v43, %v152_v0  ;;  %v208_v43 = vmul.f32 %v837_v46, %v883_v13  ;;  %v209_v0 = vmul.f32 %v839_v48, %v883_v13 }
  0xb6   :  { %v344_v52 = vadd.f32 %v336_v27, %v320_v33  ;;  %v345_v53 = vadd.f32 %v337_v31, %v321_v36  ;;  %658 = vpow2.f32 %v607_v34  ;;  %v176_v33 = vadd.f32 %v168_v1, %v136_v56 }
  0xb7   :  { %660 = vpow2.f32 %v608_v47  ;;  %v177_v27 = vadd.f32 %v169_v5, %v137_v57 }
  0xb8   :  { %v184_v51 = vpop.permute.xlu1 %183  ;;  %v909_v40 = vadd.f32 %v360_v20, %v344_v52  ;;  %v911_v30 = vadd.f32 %v361_v32, %v345_v53 }
  0xb9   :  { %v204_v41 = vmul.f32 %v837_v46, %v184_v51  ;;  %v205_v42 = vmul.f32 %v839_v48, %v184_v51  ;;  %v356_v12 = vmul.f32 %v841_v49, %v184_v51  ;;  %v357_v39 = vmul.f32 %v843_v50, %v184_v51 }
  0xba   :  { %v613_v44 = vmul.f32 -1.442695, %v909_v40  ;;  %v614_v45 = vmul.f32 -1.442695, %v911_v30  ;;  %v957_v26 = vadd.f32 %v209_v0, %v177_v27 }
  0xbb   :  { %v920_v59 = vadd.f32 %v204_v41, %v172_v15  ;;  %v922_v60 = vadd.f32 %v205_v42, %v173_v16  ;;  %v924_v61 = vadd.f32 %v356_v12, %v340_v17  ;;  %v926_v62 = vadd.f32 %v357_v39, %v341_v21 }
  0xbc   :  { %v188_v2 = vpop.permute.xlu1 %187  ;;  %662 = vpow2.f32 %v613_v44  ;;  %v606_v56 = vmul.f32 -1.442695, %v957_v26 }
  0xbd   :  { %v358_v6 = vmul.f32 %v841_v49, %v188_v2  ;;  %v359_v7 = vmul.f32 %v843_v50, %v188_v2  ;;  %v206_v10 = vmul.f32 %v837_v46, %v188_v2  ;;  %v601_v15 = vmul.f32 -1.442695, %v920_v59 }
  0xbe   :  { %v602_v16 = vmul.f32 -1.442695, %v922_v60  ;;  %v609_v8 = vmul.f32 -1.442695, %v924_v61  ;;  %v207_v37 = vmul.f32 %v839_v48, %v188_v2  ;;  %v610_v17 = vmul.f32 -1.442695, %v926_v62 }
  0xbf   :  { %v939_v21 = vadd.f32 %v358_v6, %v342_v3  ;;  %664 = vpow2.f32 %v614_v45  ;;  %v174_v49 = vadd.f32 %v166_v9, %v134_v22  ;;  %v175_v50 = vadd.f32 %v167_v63, %v135_v25 }
  0xc0   :  { %666 = vpow2.f32 %v601_v15  ;;  %v943_v29 = vadd.f32 %v359_v7, %v343_v4  ;;  %v953_v22 = vadd.f32 %v208_v43, %v176_v33 }
  0xc1   :  { %668 = vpow2.f32 %v602_v16  ;;  %v611_v35 = vmul.f32 -1.442695, %v939_v21  ;;  %v655_v36 = vpop.eup %654  ;;  %v948_v20 = vadd.f32 %v206_v10, %v174_v49  ;;  %v950_v46 = vadd.f32 %v207_v37, %v175_v50 }
  0xc2   :  { %670 = vpow2.f32 %v609_v8  ;;  %v657_v23 = vpop.eup %656  ;;  %v242_v24 = vadd.f32 1.0, %v655_v36  ;;  %v612_v34 = vmul.f32 -1.442695, %v943_v29  ;;  %v605_v52 = vmul.f32 -1.442695, %v953_v22 }
  0xc3   :  { %672 = vpow2.f32 %v610_v17  ;;  %v243_v31 = vadd.f32 1.0, %v657_v23  ;;  %v659_v32 = vpop.eup %658  ;;  %v603_v48 = vmul.f32 -1.442695, %v948_v20  ;;  %v604_v25 = vmul.f32 -1.442695, %v950_v46 }
  0xc4   :  { %674 = vpow2.f32 %v611_v35  ;;  %v661_v13 = vpop.eup %660  ;;  %v394_v47 = vadd.f32 1.0, %v659_v32 }
  0xc5   :  { %676 = vrcp.f32 %v242_v24  ;;  %v395_v54 = vadd.f32 1.0, %v661_v13 }
  0xc6   :  { %678 = vrcp.f32 %v243_v31 }
  0xc7   :  { %680 = vpow2.f32 %v612_v34 }
  0xc8   :  { %682 = vpow2.f32 %v603_v48 }
  0xc9   :  { %v663_v53 = vpop.eup %662  ;;  %684 = vpow2.f32 %v604_v25 }
  0xca   :  { %686 = vrcp.f32 %v394_v47  ;;  %v400_v3 = vadd.f32 1.0, %v663_v53 }
  0xcb   :  { %688 = vpow2.f32 %v605_v52 }
  0xcc   :  { %v665_v57 = vpop.eup %664  ;;  %690 = vrcp.f32 %v395_v54 }
  0xcd   :  { %v667_v58 = vpop.eup %666  ;;  %692 = vpow2.f32 %v606_v56  ;;  %v401_v5 = vadd.f32 1.0, %v665_v57 }
  0xce   :  { %v669_v55 = vpop.eup %668  ;;  %v244_v51 = vadd.f32 1.0, %v667_v58 }
  0xcf   :  { %v671_v41 = vpop.eup %670  ;;  %v245_v42 = vadd.f32 1.0, %v669_v55 }
  0xd0   :  { %v673_v12 = vpop.eup %672  ;;  %694 = vrcp.f32 %v244_v51  ;;  %v396_v39 = vadd.f32 1.0, %v671_v41 }
  0xd1   :  { %v675_v9 = vpop.eup %674  ;;  %696 = vrcp.f32 %v245_v42  ;;  %v397_v44 = vadd.f32 1.0, %v673_v12 }
  0xd2   :  { %v677_v45 = vpop.eup %676  ;;  %698 = vrcp.f32 %v396_v39  ;;  %v398_v63 = vadd.f32 1.0, %v675_v9  ;;  %v463_v9 = vand.u32 127, %v58_v11 }
  0xd3   :  { %v679_v1 = vpop.eup %678  ;;  %v266_v2 = vmul.f32 %v677_v45, %v885_v18  ;;  %700 = vrcp.f32 %v397_v44 }
  0xd4   :  { %v267_v4 = vmul.f32 %v679_v1, %v887_v19  ;;  %702 = vrcp.f32 %v398_v63  ;;  %v681_v6 = vpop.eup %680  ;;  %v468_v45 = vadd.s32 4294967288, %v463_v9  ;;  %v475_v1 = vadd.s32 4294967280, %v463_v9 }
  0xd5   :  { %v683_v10 = vpop.eup %682  ;;  %v399_v15 = vadd.f32 1.0, %v681_v6  ;;  %704 = vrcp.f32 %v400_v3  ;;  %v466_v3 = vsub.s32 %v463_v9, %v811_v14 }
  0xd6   :  { %v426_v7 = vadd.f32 %v267_v4, %v266_v2  ;;  %v685_v16 = vpop.eup %684  ;;  %v246_v8 = vadd.f32 1.0, %v683_v10  ;;  %706 = vrcp.f32 %v401_v5  ;;  %v482_v2 = vadd.s32 4294967272, %v463_v9 }
  0xd7   :  { %v687_v37 = vpop.eup %686  ;;  %708 = vrcp.f32 %v399_v15  ;;  %v247_v17 = vadd.f32 1.0, %v685_v16  ;;  %v471_v4 = vsub.s32 %v468_v45, %v811_v14  ;;  %v478_v5 = vsub.s32 %v475_v1, %v811_v14 }
  0xd8   :  { %427 = vadd.xlane.f32.xlu1 %v426_v7  ;;  %v689_v43 = vpop.eup %688  ;;  %710 = vrcp.f32 %v246_v8  ;;  %v418_v34 = vmul.f32 %v687_v37, %v889_v28  ;;  %v485_v10 = vsub.s32 %v482_v2, %v811_v14 }
  0xd9   :  { %v691_v18 = vpop.eup %690  ;;  %712 = vrcp.f32 %v247_v17  ;;  %v248_v49 = vadd.f32 1.0, %v689_v43 }
  0xda   :  { %v693_v19 = vpop.eup %692  ;;  %v419_v48 = vmul.f32 %v691_v18, %v893_v38 }
  0xdb   :  { %v249_v35 = vadd.f32 1.0, %v693_v19  ;;  %714 = vrcp.f32 %v248_v49 }
  0xdd   :  { %v695_v50 = vpop.eup %694  ;;  %716 = vrcp.f32 %v249_v35 }
  0xde   :  { %v697_v33 = vpop.eup %696  ;;  %v268_v36 = vmul.f32 %v695_v50, %v920_v59  ;;  %v438_v59 = vadd.f32 %v419_v48, %v418_v34 }
  0xdf   :  { %v699_v0 = vpop.eup %698  ;;  %v269_v23 = vmul.f32 %v697_v33, %v922_v60 }
  0xe0   :  { %v701_v24 = vpop.eup %700  ;;  %v420_v27 = vmul.f32 %v699_v0, %v924_v61 }
  0xe1   :  { %v429_v31 = vadd.f32 %v269_v23, %v268_v36  ;;  %v421_v32 = vmul.f32 %v701_v24, %v926_v62  ;;  %v703_v13 = vpop.eup %702  ;;  %v615_v24 = vld [vmem:[%s1002_s2 + $0x20] ss:$0 sm:$0xff] }
  0xe2   :  { %v705_v47 = vpop.eup %704  ;;  %v422_v60 = vmul.f32 %v703_v13, %v939_v21 }
  0xe3   :  { %430 = vadd.xlane.f32.xlu0 %v429_v31  ;;  %v441_v25 = vadd.f32 %v421_v32, %v420_v27  ;;  %v707_v52 = vpop.eup %706  ;;  %v424_v57 = vmul.f32 %v705_v47, %v909_v40  ;;  %v768_v40 = vmov 0.0  }
  0xe4   :  { %v709_v53 = vpop.eup %708  ;;  %v425_v58 = vmul.f32 %v707_v52, %v911_v30  ;;  %622 = vmatprep.subr.mxu0 %v768_v40  ;;  %v35_v30 = vld [vmem:[%s1002_s2 + $0x10] sm:$0xff]  ;;  %630 = vmatprep.mubr.msk.f32.mxu0 %vm769_vm0, %v768_v40 }
  0xe5   :  { %442 = vadd.xlane.f32.xlu1 %v441_v25  ;;  %v711_v54 = vpop.eup %710  ;;  %v423_v61 = vmul.f32 %v709_v53, %v943_v29 }
  0xe6   :  { %v713_v56 = vpop.eup %712  ;;  %v270_v62 = vmul.f32 %v711_v54, %v948_v20  ;;  %v447_v42 = vadd.f32 %v425_v58, %v424_v57  ;;  %v36_v20 = vld [vmem:[%s1002_s2 + $0x18] sm:$0xff] }
  0xe7   :  { %439 = vadd.xlane.f32.xlu0 %v438_v59  ;;  %v444_v28 = vadd.f32 %v423_v61, %v422_v60  ;;  %v271_v38 = vmul.f32 %v713_v56, %v950_v46  ;;  %623 = vmatpush3.msra.mxu0 %v36_v20  ;;  %v34_v46 = vld [vmem:[%s1002_s2 + $0x8] sm:$0xff] }
  0xe8   :  { %v715_v55 = vpop.eup %714  ;;  %624 = vmatprep.subr.mxu0 %v768_v40 }
  0xe9   :  { %445 = vadd.xlane.f32.xlu1 %v444_v28  ;;  %v432_v51 = vadd.f32 %v271_v38, %v270_v62  ;;  %v272_v21 = vmul.f32 %v715_v55, %v953_v22  ;;  %625 = vmatpush3.msra.mxu0 %v35_v30  ;;  %v33_v22 = vld [vmem:[%s1002_s2] sm:$0xff] }
  0xea   :  { %v717_v41 = vpop.eup %716  ;;  %626 = vmatprep.subr.mxu0 %v768_v40 }
  0xeb   :  { %433 = vadd.xlane.f32.xlu0 %v432_v51  ;;  %v273_v29 = vmul.f32 %v717_v41, %v957_v26  ;;  %627 = vmatpush3.msra.mxu0 %v34_v46 }
  0xec   :  { %628 = vmatprep.subr.mxu0 %v768_v40 }
  0xed   :  { %448 = vadd.xlane.f32.xlu1 %v447_v42  ;;  %v435_v12 = vadd.f32 %v273_v29, %v272_v21  ;;  %629 = vmatpush3.msra.mxu0 %v33_v22 }
  0xef   :  { %436 = vadd.xlane.f32.xlu0 %v435_v12 }
 0x161   :  { %v428_v26 = vpop.xlane.xlu1 %427 }
 0x162   :  { %v467_v43 = vrot.slane %v428_v26, %v466_v3 }
 0x16c   :  { %v431_v39 = vpop.xlane.xlu0 %430 }
 0x16d   :  { %v472_v16 = vrot.slane %v431_v39, %v471_v4 }
 0x16e   :  { %v443_v44 = vpop.xlane.xlu1 %442 }
 0x16f   :  { %v496_v8 = vrot.slane %v443_v44, %v471_v4  ;;  %v474_v50 = vsel %vm473_vm1, %v472_v16, %v467_v43 }
 0x170   :  { %v440_v63 = vpop.xlane.xlu0 %439 }
 0x171   :  { %v492_v7 = vrot.slane %v440_v63, %v466_v3 }
 0x172   :  { %v446_v6 = vpop.xlane.xlu1 %445 }
 0x173   :  { %v501_v11 = vrot.slane %v446_v6, %v478_v5  ;;  %v497_v18 = vsel %vm473_vm1, %v496_v8, %v492_v7 }
 0x174   :  { %v434_v15 = vpop.xlane.xlu0 %433 }
 0x175   :  { %v479_v37 = vrot.slane %v434_v15, %v478_v5  ;;  %v502_v33 = vsel %vm480_vm2, %v501_v11, %v497_v18 }
 0x176   :  { %v449_v17 = vpop.xlane.xlu1 %448 }
 0x177   :  { %v506_v49 = vrot.slane %v449_v17, %v485_v10  ;;  %v481_v36 = vsel %vm480_vm2, %v479_v37, %v474_v50 }
 0x178   :  { %v437_v19 = vpop.xlane.xlu0 %436 }
 0x179   :  { %v486_v35 = vrot.slane %v437_v19, %v485_v10  ;;  %v507_v14 = vsel %vm487_vm3, %v506_v49, %v502_v33 }
 0x17b   :  { %v488_v0 = vsel %vm487_vm3, %v486_v35, %v481_v36 }
 0x17c   :  { %v509_v23 = vsel %vm508_vm4, %v507_v14, %v488_v0 }
 0x17d   :  { %631 = vmatmul.mubr.msk.f32.vlgmr.msra.gmra.mxu0 %vm510_vm5, %v509_v23 }
 0x23d   :  { %v579_v27 = vpop.f32.mrf.mxu0 }
 0x23e   :  { %v580_v31 = vadd.f32 %v615_v24, %v579_v27 }
 0x23f   :  { %v632_v32 = vpop.f32.mrf.mxu0 }
 0x240   :  { %583 = vst [vmem:[#allocation5] sm:$0x3] %v580_v31 }
 0x241   :  { %749 = shalt.err (!%p746_p9)
}
 0x242   :  { %593 = dma.vmem_to_hbm [thread:$0]  %s591_s7, 32, %s1003_s3, [#allocation4]  }
 0x243   :  { %760 = dma.done.wait [#allocation4], 32  }
 0x244   :  { %761 = vsyncadd [#allocation4], 4294967264 }
 0x245   :  { %597 = vsyncpa [#allocation3], 1 }
 0x246   :  { %598 = vsyncpa [#allocation4], 1 }

</bundles_post_ra>
